<compile_context>
chip_gen: v6e
topology: v6e:2x2x1
jax: 0.10.0
libtpu: 0.0.40
codegen_flags: <defaults>
</compile_context>

<pallas_src>
import math
import functools

import jax
import jax.numpy as jnp
from jax.experimental import pallas as pl
from jax.experimental.pallas import tpu as pltpu


def gcnii_kernel(scale_ref, adj_ref, x_ref, h0_ref, w_ref, out_ref, *,
                 alpha, theta, residual, folded, tm, tk):
    """One (row-tile i, K-tile k) step of the GCNII forward.

    scale_ref : (1,)      SMEM f32 dequant scale for adj (1.0 if not quantized)
    adj_ref   : (tm, tk)  adjacency tile (compute / int8 / fp8 dtype)
    x_ref     : (N, F)    full feature matrix, VMEM-resident (compute dtype)
    h0_ref    : (tm, F)   initial-residual row tile (f32)
    w_ref     : (F, F)    (possibly identity-folded) weight (compute dtype)
    out_ref   : (tm, F)   f32 output row tile, doubles as the hi accumulator
    """
    i = pl.program_id(0)
    k = pl.program_id(1)

    @pl.when(k == 0)
    def _init():
        out_ref[...] = jnp.zeros_like(out_ref)

    # hi += adj_tile @ x[k*tk : k*tk+tk, :]   (MXU, f32 accumulation into out_ref)
    k_off = pl.multiple_of(k * tk, tk)
    x_chunk = x_ref[pl.ds(k_off, tk), :]
    adj_tile = adj_ref[...]
    if adj_tile.dtype != x_chunk.dtype:
        # quantized adjacency: convert on the VPU; dequant scale applied at finalize
        adj_tile = adj_tile.astype(jnp.float32).astype(x_chunk.dtype)
    out_ref[...] += jnp.dot(adj_tile, x_chunk,
                            preferred_element_type=jnp.float32)

    @pl.when(k == pl.num_programs(1) - 1)
    def _finalize():
        hi = out_ref[...]
        # support = (1-alpha) * (scale * hi) + alpha * h0    (non-variant path)
        support = ((1.0 - alpha) * scale_ref[0]) * hi \
                  + alpha * h0_ref[...].astype(jnp.float32)

        if folded:
            # W' = theta*W + (1-theta)*I folded outside the kernel
            out = jnp.dot(support.astype(w_ref.dtype), w_ref[...],
                          preferred_element_type=jnp.float32)
        else:
            out = theta * jnp.dot(support.astype(w_ref.dtype), w_ref[...],
                                  preferred_element_type=jnp.float32) \
                  + (1.0 - theta) * support

        if residual:
            i_off = pl.multiple_of(i * tm, tm)
            out = out + x_ref[pl.ds(i_off, tm), :].astype(jnp.float32)

        out_ref[...] = out.astype(out_ref.dtype)


def gcnii_forward(x, adj, h0, weight, lamda, alpha, l, *,
                  residual=True, tm=512, tk=1024,
                  compute_dtype=jnp.bfloat16, adj_dtype=None,
                  fold_identity=True):
    """Pallas wrapper for GraphConvolutionWithResidual.forward (variant=False).

    adj_dtype: None (use compute_dtype), jnp.int8 (scale-quantized, v5e/v6e),
               or a float dtype such as jnp.float8_e4m3fn (v7x).
    Output is always f32.
    """
    N, F = x.shape
    F_in, F_out = weight.shape
    assert F_in == F, "non-variant: weight in_features must equal feature dim"
    assert F_out == F_in, "variant=False requires square weight (S@W + S add)"

    theta = math.log(lamda / l + 1.0)

    # ---- tile clamping -------------------------------------------------------
    tm = min(tm, N)
    tk = min(tk, N)
    # Keep >= 2 row tiles on the "parallel" axis so v7x's two TensorCores both
    # get work (no effect on single-TC v5e/v6e).
    if tm == N and N % 16 == 0 and N // 2 >= 8:
        tm = N // 2
    assert N % tm == 0 and N % tk == 0, "N must divide the row/K tiles"
    assert tm == N or tm % 8 == 0
    assert tk == N or tk % 128 == 0

    cbytes = jnp.dtype(compute_dtype).itemsize
    # Resident-x path: whole feature matrix lives in VMEM (double-buffered).
    assert 2 * N * F * cbytes <= 16 * 1024 * 1024, \
        "x too large for the resident-x path (streamed-x fallback TODO)"

    # ---- adjacency storage dtype / quantization ------------------------------
    if adj_dtype is not None and jnp.dtype(adj_dtype) == jnp.dtype(jnp.int8):
        # Global-scale symmetric int8 quantization; dequant folded into (1-alpha).
        amax = jnp.max(jnp.abs(adj)).astype(jnp.float32)
        scale = jnp.maximum(amax, 1e-30) / 127.0
        adj_store = jnp.clip(jnp.round(adj / scale), -127.0, 127.0).astype(jnp.int8)
        scale_arr = jnp.reshape(scale, (1,))
        assert tm == N or tm % 32 == 0, "int8 adj tiles want 32-row alignment"
    else:
        adj_store = adj.astype(adj_dtype if adj_dtype is not None else compute_dtype)
        scale_arr = jnp.ones((1,), jnp.float32)

    # ---- weight: fold (1-theta)*I into W when requested ----------------------
    if fold_identity:
        w_eff = theta * weight + (1.0 - theta) * jnp.eye(F_in, dtype=weight.dtype)
    else:
        w_eff = weight
    w_c = w_eff.astype(compute_dtype)

    # Single HBM copy of x; the same resident copy supplies the residual rows.
    x_c = x.astype(compute_dtype)
    h0_f = h0.astype(jnp.float32)

    # ---- VMEM budget & generation-aware limit --------------------------------
    adj_b = jnp.dtype(adj_store.dtype).itemsize
    est = (2 * tm * tk * adj_b            # adj tile (double-buffered)
           + 2 * N * F * cbytes           # resident x
           + 2 * tm * F * 4               # h0 row tile (f32)
           + 2 * F_in * F_out * cbytes    # weight
           + 2 * tm * F_out * 4)          # f32 output / accumulator tile
    try:
        vmem_cap = int(pltpu.get_tpu_info().vmem_capacity_bytes)
    except Exception:
        vmem_cap = 64 * 1024 * 1024       # conservative: v7x per-core VMEM
    ceiling = int(0.6 * vmem_cap)         # leave headroom for compiler scratch
    vmem_limit = int(min(max(2 * est, min(16 * 1024 * 1024, ceiling)), ceiling))

    kernel = functools.partial(
        gcnii_kernel, alpha=float(alpha), theta=float(theta),
        residual=residual, folded=fold_identity, tm=tm, tk=tk)

    grid = (N // tm, N // tk)

    return pl.pallas_call(
        kernel,
        out_shape=jax.ShapeDtypeStruct((N, F_out), jnp.float32),
        grid=grid,
        in_specs=[
            pl.BlockSpec(memory_space=pltpu.MemorySpace.SMEM),   # dequant scale
            pl.BlockSpec((tm, tk), lambda i, k: (i, k)),         # adj tile
            pl.BlockSpec((N, F), lambda i, k: (0, 0)),           # resident x
            pl.BlockSpec((tm, F), lambda i, k: (i, 0)),          # h0 row tile
            pl.BlockSpec((F_in, F_out), lambda i, k: (0, 0)),    # weight
        ],
        out_specs=pl.BlockSpec((tm, F_out), lambda i, k: (i, 0)),
        compiler_params=pltpu.CompilerParams(
            dimension_semantics=("parallel", "arbitrary"),
            vmem_limit_bytes=vmem_limit),
    )(scale_arr, adj_store, x_c, h0_f, w_c)


def gcnii_reference(x, adj, h0, weight, lamda, alpha, l, *, residual=True):
    """Pure-JAX reference mirroring the PyTorch forward (variant=False)."""
    theta = math.log(lamda / l + 1.0)
    hi = adj @ x
    support = (1.0 - alpha) * hi + alpha * h0
    out = theta * (support @ weight) + (1.0 - theta) * support
    if residual:
        out = out + x
    return out


if __name__ == "__main__":
    # Small, deterministic example. GCNII uses in_features == out_features.
    N = 256         # number of graph nodes
    F = 128         # hidden feature dim
    lamda, alpha, layer_l = 0.5, 0.1, 1

    key = jax.random.PRNGKey(0)
    k_x, k_adj, k_h0, k_w = jax.random.split(key, 4)

    x = jax.random.normal(k_x, (N, F), dtype=jnp.float32)
    adj = jax.random.uniform(k_adj, (N, N), dtype=jnp.float32) / N   # dense "normalized" adj
    h0 = jax.random.normal(k_h0, (N, F), dtype=jnp.float32)

    # Parameter init matching reset_parameters(): U(-stdv, stdv), stdv = 1/sqrt(out_features)
    stdv = 1.0 / math.sqrt(F)
    weight = jax.random.uniform(k_w, (F, F), dtype=jnp.float32,
                                minval=-stdv, maxval=stdv)

    ref = gcnii_reference(x, adj, h0, weight, lamda, alpha, layer_l, residual=True)

    # 1) f32 MXU path, no identity folding: near-exact parity with the reference.
    out_f32 = gcnii_forward(x, adj, h0, weight, lamda, alpha, layer_l,
                            residual=True, compute_dtype=jnp.float32,
                            fold_identity=False)
    out_f32 = jax.block_until_ready(out_f32)
    assert out_f32.shape == (N, F) and out_f32.dtype == jnp.float32
    assert jnp.allclose(out_f32, ref, rtol=1e-3, atol=1e-3), "f32 mismatch vs reference"

    # 2) bf16 MXU path (default perf configuration): f32 accumulation, folded W'.
    out_bf16 = gcnii_forward(x, adj, h0, weight, lamda, alpha, layer_l,
                             residual=True, compute_dtype=jnp.bfloat16)
    out_bf16 = jax.block_until_ready(out_bf16)
    assert out_bf16.shape == (N, F) and out_bf16.dtype == jnp.float32
    assert jnp.allclose(out_bf16, ref, rtol=3e-2, atol=3e-2), "bf16 mismatch vs reference"

    # 3) int8-quantized adjacency + bf16 x/W (v5e/v6e bandwidth configuration).
    out_int8 = gcnii_forward(x, adj, h0, weight, lamda, alpha, layer_l,
                             residual=True, compute_dtype=jnp.bfloat16,
                             adj_dtype=jnp.int8)
    out_int8 = jax.block_until_ready(out_int8)
    assert out_int8.shape == (N, F) and out_int8.dtype == jnp.float32
    assert jnp.allclose(out_int8, ref, rtol=5e-2, atol=5e-2), "int8-adj mismatch vs reference"

    print("KERNEL_OK")
</pallas_src>

<mosaic_0001>
module attributes {stable_mosaic.version = 11 : i64} {
  func.func @gcnii_kernel(%arg0: i32, %arg1: i32, %arg2: memref<1xf32, #tpu.memory_space<smem>>, %arg3: memref<128x256xf32, #tpu.memory_space<vmem>>, %arg4: memref<256x128xf32, #tpu.memory_space<vmem>>, %arg5: memref<128x128xf32, #tpu.memory_space<vmem>>, %arg6: memref<128x128xf32, #tpu.memory_space<vmem>>, %arg7: memref<128x128xf32, #tpu.memory_space<vmem>>) attributes {dimension_semantics = [#tpu.dimension_semantics<parallel>, #tpu.dimension_semantics<arbitrary>], iteration_bounds = array<i64: 2, 1>, scalar_prefetch = 0 : i64, scratch_operands = 0 : i64, tpu.core_type = #tpu.core_type<tc>, window_params = [{transform_indices = @transform_0, window_bounds = array<i64: 1>}, {transform_indices = @transform_1, window_bounds = array<i64: 128, 256>}, {pipeline_mode = #tpu.pipeline_mode<synchronous>, transform_indices = @transform_2, window_bounds = array<i64: 256, 128>}, {transform_indices = @transform_3, window_bounds = array<i64: 128, 128>}, {pipeline_mode = #tpu.pipeline_mode<synchronous>, transform_indices = @transform_4, window_bounds = array<i64: 128, 128>}, {transform_indices = @transform_5, window_bounds = array<i64: 128, 128>}]} {
    %c0_i32 = arith.constant 0 : i32
    %0 = arith.cmpi eq, %arg1, %c0_i32 : i32
    %1 = arith.extui %0 : i1 to i32
    %c0_i32_0 = arith.constant 0 : i32
    %2 = arith.cmpi ne, %1, %c0_i32_0 : i32
    scf.if %2 {
      %cst_9 = arith.constant 0.000000e+00 : f32
      %15 = vector.broadcast %cst_9 : f32 to vector<128x128xf32>
      %c0_10 = arith.constant 0 : index
      %c0_11 = arith.constant 0 : index
      %16 = vector.load %arg7[%c0_10, %c0_11] : memref<128x128xf32, #tpu.memory_space<vmem>>, vector<128x128xf32>
      tpu.vector_store %arg7[%c0_10, %c0_11], %15 {strides = array<i32>} : memref<128x128xf32, #tpu.memory_space<vmem>>, vector<128x128xf32>,
    } else {
    }
    %c256_i32 = arith.constant 256 : i32
    %3 = arith.muli %arg1, %c256_i32 : i32
    %4 = tpu.assume_multiple %3, 256 : i32
    %5 = arith.index_cast %4 : i32 to index
    %c0 = arith.constant 0 : index
    %6 = vector.load %arg4[%5, %c0] : memref<256x128xf32, #tpu.memory_space<vmem>>, vector<256x128xf32>
    %c0_1 = arith.constant 0 : index
    %c0_2 = arith.constant 0 : index
    %7 = vector.load %arg3[%c0_1, %c0_2] : memref<128x256xf32, #tpu.memory_space<vmem>>, vector<128x256xf32>
    %c0_3 = arith.constant 0 : index
    %c0_4 = arith.constant 0 : index
    %8 = vector.load %arg7[%c0_3, %c0_4] : memref<128x128xf32, #tpu.memory_space<vmem>>, vector<128x128xf32>
    %cst = arith.constant dense<0.000000e+00> : vector<128x128xf32>
    %9 = tpu.matmul %7, %6, %cst {dimension_numbers = #tpu.dot_dimension_numbers<[1], [0], [0], [1], [0, 0, 1, 1], [], []>} : vector<128x256xf32>, vector<256x128xf32>, vector<128x128xf32> -> vector<128x128xf32>
    %10 = arith.addf %8, %9 : vector<128x128xf32>
    %c0_5 = arith.constant 0 : index
    %c0_6 = arith.constant 0 : index
    %11 = vector.load %arg7[%c0_5, %c0_6] : memref<128x128xf32, #tpu.memory_space<vmem>>, vector<128x128xf32>
    tpu.vector_store %arg7[%c0_5, %c0_6], %10 {strides = array<i32>} : memref<128x128xf32, #tpu.memory_space<vmem>>, vector<128x128xf32>,
    %c0_i32_7 = arith.constant 0 : i32
    %12 = arith.cmpi eq, %arg1, %c0_i32_7 : i32
    %13 = arith.extui %12 : i1 to i32
    %c0_i32_8 = arith.constant 0 : i32
    %14 = arith.cmpi ne, %13, %c0_i32_8 : i32
    scf.if %14 {
      %c0_9 = arith.constant 0 : index
      %c0_10 = arith.constant 0 : index
      %15 = vector.load %arg7[%c0_9, %c0_10] : memref<128x128xf32, #tpu.memory_space<vmem>>, vector<128x128xf32>
      %c0_11 = arith.constant 0 : index
      %16 = memref.load %arg2[%c0_11] : memref<1xf32, #tpu.memory_space<smem>>
      %cst_12 = arith.constant 0.899999976 : f32
      %17 = arith.mulf %cst_12, %16 : f32
      %18 = vector.broadcast %17 : f32 to vector<128x128xf32>
      %19 = arith.mulf %18, %15 : vector<128x128xf32>
      %c0_13 = arith.constant 0 : index
      %c0_14 = arith.constant 0 : index
      %20 = vector.load %arg5[%c0_13, %c0_14] : memref<128x128xf32, #tpu.memory_space<vmem>>, vector<128x128xf32>
      %cst_15 = arith.constant 1.000000e-01 : f32
      %21 = vector.broadcast %cst_15 : f32 to vector<128x128xf32>
      %22 = arith.mulf %21, %20 : vector<128x128xf32>
      %23 = arith.addf %19, %22 : vector<128x128xf32>
      %c0_16 = arith.constant 0 : index
      %c0_17 = arith.constant 0 : index
      %24 = vector.load %arg6[%c0_16, %c0_17] : memref<128x128xf32, #tpu.memory_space<vmem>>, vector<128x128xf32>
      %cst_18 = arith.constant dense<0.000000e+00> : vector<128x128xf32>
      %25 = tpu.matmul %23, %24, %cst_18 {dimension_numbers = #tpu.dot_dimension_numbers<[1], [0], [0], [1], [0, 0, 1, 1], [], []>} : vector<128x128xf32>, vector<128x128xf32>, vector<128x128xf32> -> vector<128x128xf32>
      %cst_19 = arith.constant 0.405465096 : f32
      %26 = vector.broadcast %cst_19 : f32 to vector<128x128xf32>
      %27 = arith.mulf %26, %25 : vector<128x128xf32>
      %cst_20 = arith.constant 0.594534874 : f32
      %28 = vector.broadcast %cst_20 : f32 to vector<128x128xf32>
      %29 = arith.mulf %28, %23 : vector<128x128xf32>
      %30 = arith.addf %27, %29 : vector<128x128xf32>
      %c128_i32 = arith.constant 128 : i32
      %31 = arith.muli %arg0, %c128_i32 : i32
      %32 = tpu.assume_multiple %31, 128 : i32
      %33 = arith.index_cast %32 : i32 to index
      %c0_21 = arith.constant 0 : index
      %34 = vector.load %arg4[%33, %c0_21] : memref<256x128xf32, #tpu.memory_space<vmem>>, vector<128x128xf32>
      %35 = arith.addf %30, %34 : vector<128x128xf32>
      %c0_22 = arith.constant 0 : index
      %c0_23 = arith.constant 0 : index
      %36 = vector.load %arg7[%c0_22, %c0_23] : memref<128x128xf32, #tpu.memory_space<vmem>>, vector<128x128xf32>
      tpu.vector_store %arg7[%c0_22, %c0_23], %35 {strides = array<i32>} : memref<128x128xf32, #tpu.memory_space<vmem>>, vector<128x128xf32>,
    } else {
    }
    return
  }
  func.func @transform_0(%arg0: i32, %arg1: i32) -> i32 {
    %c0_i32 = arith.constant 0 : i32
    %c0_i32_0 = arith.constant 0 : i32
    return %c0_i32 : i32
  }
  func.func @transform_1(%arg0: i32, %arg1: i32) -> (i32, i32) {
    %c0_i32 = arith.constant 0 : i32
    return %arg0, %arg1 : i32, i32
  }
  func.func @transform_2(%arg0: i32, %arg1: i32) -> (i32, i32) {
    %c0_i32 = arith.constant 0 : i32
    %c0_i32_0 = arith.constant 0 : i32
    %c0_i32_1 = arith.constant 0 : i32
    return %c0_i32, %c0_i32_0 : i32, i32
  }
  func.func @transform_3(%arg0: i32, %arg1: i32) -> (i32, i32) {
    %c0_i32 = arith.constant 0 : i32
    %c0_i32_0 = arith.constant 0 : i32
    return %arg0, %c0_i32 : i32, i32
  }
  func.func @transform_4(%arg0: i32, %arg1: i32) -> (i32, i32) {
    %c0_i32 = arith.constant 0 : i32
    %c0_i32_0 = arith.constant 0 : i32
    %c0_i32_1 = arith.constant 0 : i32
    return %c0_i32, %c0_i32_0 : i32, i32
  }
  func.func @transform_5(%arg0: i32, %arg1: i32) -> (i32, i32) {
    %c0_i32 = arith.constant 0 : i32
    %c0_i32_0 = arith.constant 0 : i32
    return %arg0, %c0_i32 : i32, i32
  }
}

</mosaic_0001>

<bundles_post_ra>
// kernel: tpu_custom_call.1
= control target key start
LH: loop header
LB: loop body
LE: loop exit
PB: predicated region body
PF: predicated region fallthrough
CT: control target
= control target key end

     0   :  { %s2037_s0 = inlined_call_operand.<no memory space> [shape: f32[1], index: 0, kind: input, shape index: {}]   ;;  %s2038_s1 = inlined_call_operand.hbm [shape: f32[256,256], index: 1, kind: input, shape index: {}]   ;;  %s2039_s2 = inlined_call_operand.hbm [shape: f32[256,128], index: 2, kind: input, shape index: {}]   ;;  %s2040_s3 = inlined_call_operand.hbm [shape: f32[256,128], index: 3, kind: input, shape index: {}]   ;;  %s2041_s4 = inlined_call_operand.hbm [shape: f32[128,128], index: 4, kind: input, shape index: {}]   ;;  %s2042_s5 = inlined_call_operand.hbm [shape: f32[256,128], index: 5, kind: output, shape index: {}]  }
   0x1   :  { %2051 = sst [smem:[#allocation17_spill]] %s2038_s1 }
   0x2   :  { %2052 = sst [smem:[#allocation18_spill]] %s2039_s2 }
   0x3   :  { %10 = sst [smem:[#allocation2]] %s2037_s0 }
   0x4   :  { %11 = vsyncpa [#allocation4], 0 }
   0x5   :  { %13 = vsyncpa [#allocation4 + $0x1], 0 }
   0x6   :  { %14 = vsyncpa [#allocation7], 0 }
   0x7   :  { %15 = vsyncpa [#allocation5], 0 }
   0x8   :  { %17 = vsyncpa [#allocation5 + $0x1], 0  ;;  %s1634_s20 = smov 0   ;;  %s1636_s21 = smov 0  }
   0x9   :  { %s1638_s22 = smov 0   ;;  %s1640_s23 = smov 0  }
   0xa   :  { %s1642_s24 = smov 0   ;;  %s1644_s25 = smov 0  }
   0xb LB: > { %s1665_s0 = sadd.s32 4294967295, %s1588_s25   ;;  %s1097_s26 = sadd.s32 4294967294, %s1588_s25   ;;  %s1588_s25 = sphi %s1644_s25, %s23_s25   ;;  %s1584_s24 = sphi %s1642_s24, %s2078_s24   ;;  %s1580_s23 = sphi %s1640_s23, %s2077_s23   ;;  %s1576_s22 = sphi %s1638_s22, %s2076_s22   ;;  %s1572_s21 = sphi %s1636_s21, %s2075_s21   ;;  %s1568_s20 = sphi %s1634_s20, %s2074_s20  }
   0xc   : > { %p78_p0 = scmp.ne.s32.totalorder %s1572_s21, %s1568_s20  ;;  %p2047_p1 = scmp.eq.s32.totalorder %s1665_s0, 0 }
   0xd   : > { %p176_p3 = scmp.eq.s32.totalorder %s1097_s26, 1  ;;  %p1098_p5 = scmp.ge.s32.totalorder %s1588_s25, 1 }
   0xe   : > { %p1674_p4 = por %p2047_p1, %p78_p0  ;;  %p183_p7 = scmp.lt.s32.totalorder %s1588_s25, 3 }
   0xf   : > { %p1679_p6 = por %p176_p3, %p78_p0  ;;  %s1590_s30 = smov [#allocation6]  }
  0x10   : > { %p1684_p8 = pnand %p1098_p5, %p183_p7  ;;  %s198_s6 = sshll.u32 %s1590_s30, 4  ;;  %s199_s6 = int_to_ptr.vmem [resolvable:$true] %s198_s6 }
  0x11   : > { %s35_s8 = sadd.s32 1, %s1584_s24  ;;  %s1399_s9 = scalar_lea.vmem %s199_s6, 4096 }
  0x12   : > { %p1307_p9 = pneg %p1684_p8  ;;  %p1400_p13 = scmp.ne.s32.totalorder %s199_s6, %s1399_s9 }
  0x13   : > { %p1407_p5 = scmp.lt.s32.totalorder %s199_s6, %s199_s6  ;;  %p1408_p7 = scmp.lt.s32.totalorder %s1399_s9, %s1399_s9 }
  0x14   : > { %p1693_p11 = pnand %p1307_p9, %p2047_p1 }
  0x15   : > { %p1409_p2 = por %p1408_p7, %p1407_p5 }
  0x16   : > { %p2048_p12 = pneg %p1693_p11 }
  0x18   : > { %p1402_p0 = pnand %p1400_p13, %p2048_p12 }
  0x1a   : > { %p1403_p3 = pneg %p1402_p0 }
  0x1c   : > { %p1410_p10 = pnand %p1409_p2, %p1403_p3 }
  0x1e   : > { %1413 = shalt.err (!%p1410_p10)
}
  0x1f   : > { %s2043_s10 = smov 128   ;;  %s2045_s11 = smov 8  }
  0x20   : > { %s2057_s2 = sld [smem:[#allocation18_spill]]  ;;  %p37_p2 = scmp.ge.s32.totalorder %s35_s8, 2 }
  0x21   : > { %s65_s14 = sadd.s32 1, %s1576_s22  ;;  %p72_p9 = scmp.ne.s32.totalorder %s1576_s22, %s1572_s21 }
  0x22   : > { %p73_p10 = scmp.eq.s32.totalorder %s1588_s25, 0  ;;  %s2080_s8 = smov (%p37_p2, %s35_s8), 0 }
  0x23   : > { %2058 = sst [smem:[#allocation16_spill]] %s2080_s8  ;;  %p2060_p0 = scmp.eq.s32.totalorder %s1665_s0, 1 }
  0x24   : > { %p1717_p13 = por %p73_p10, %p72_p9  ;;  %s60_s17 = ssub.s32 %s1584_s24, %s2080_s8 }
  0x25   : > { %p1723_p3 = por %p2060_p0, %p72_p9  ;;  %p1327_p5 = scmp.lt.s32.totalorder %s1588_s25, 2 }
  0x26   : > { %1310 = dma.hbm_to_vmem [thread:$0]  (!%p1693_p11), %s2057_s2, 4096, %s199_s6, [#allocation7], %s2043_s10, %s2043_s10, %s2045_s11  }
  0x27   : > { %p63_p7 = scmp.eq.s32.totalorder %s60_s17, 0  ;;  %s225_s18 = sand.u32 1, %s1588_s25  }
  0x28   : > { %s227_s19 = sand.u32 1, %s1576_s22   ;;  %s1122_s6 = sshll.u32 %s1584_s24, 12 }
  0x29   : > { %s1733_s26 = scalar_select %p63_p7, %s1576_s22, %s65_s14  }
  0x2a   : > { %s1102_s30 = sshll.u32 %s227_s19, 8  ;;  %s2062_s1 = sld [smem:[#allocation17_spill]] }
  0x2b   : > { %s229_s10 = scalar_lea.vmem [#allocation3], %s1102_s30  ;;  %p1743_p2 = pnand %p1327_p5, %p1717_p13 }
  0x2c   : > { %s239_s11 = sshll.u32 %s229_s10, 4  ;;  %s1747_s17 = scalar_lea.sflag [#allocation4], %s225_s18  ;;  %s240_s11 = int_to_ptr.vmem [resolvable:$true] %s239_s11 }
  0x2d   : > { %p2050_p9 = pneg %p1743_p2  ;;  %s1427_s14 = scalar_lea.vmem %s240_s11, 4096 }
  0x2e   : > { %p1428_p10 = scmp.ne.s32.totalorder %s240_s11, %s1427_s14  ;;  %s1593_s30 = smov [#allocation3]  }
  0x2f   : > { %s1432_s10 = sshll.u32 %s1593_s30, 4  ;;  %s1433_s10 = int_to_ptr.vmem [resolvable:$false] %s1432_s10 }
  0x30   : > { %s238_s13 = scalar_lea.hbm %s2062_s1, %s1122_s6  ;;  %p1430_p0 = pnand %p1428_p10, %p2050_p9 }
  0x31   : > { %s1434_s15 = scalar_lea.vmem %s1433_s10, 8192  ;;  %p1435_p13 = scmp.lt.s32.totalorder %s240_s11, %s1433_s10 }
  0x32   : > { %p1431_p7 = pneg %p1430_p0  ;;  %p1436_p5 = scmp.lt.s32.totalorder %s1434_s15, %s1427_s14 }
  0x34   : > { %p1437_p1 = por %p1436_p5, %p1435_p13 }
  0x36   : > { %p1438_p12 = pnand %p1437_p1, %p1431_p7 }
  0x38   : > { %1441 = shalt.err (!%p1438_p12)
}
  0x39   : > { %s1594_s6 = smov 256   ;;  %s1595_s18 = smov 16  }
  0x3a   : > { %1317 = dma.hbm_to_vmem [thread:$0]  (!%p1743_p2), %s238_s13, 4096, %s240_s11, %s1747_s17, %s1594_s6, %s1594_s6, %s1595_s18  }
  0x3b   : > { %s1106_s9 = sshll.u32 %s227_s19, 7  ;;  %s1596_s12 = smov [#allocation9]  }
  0x3c   : > { %s211_s1 = sshll.u32 %s1596_s12, 4  ;;  %s253_s30 = scalar_lea.vmem [#allocation8], %s1106_s9  ;;  %s212_s1 = int_to_ptr.vmem [resolvable:$true] %s211_s1 }
  0x3d   : > { %s260_s8 = sshll.u32 %s253_s30, 4  ;;  %s1453_s10 = scalar_lea.vmem %s212_s1, 2048  ;;  %s261_s8 = int_to_ptr.vmem [resolvable:$true] %s260_s8 }
  0x3e   : > { %p1454_p10 = scmp.ne.s32.totalorder %s212_s1, %s1453_s10  ;;  %p2064_p1 = pneg %p1693_p11 }
  0x3f   : > { %p1461_p7 = scmp.lt.s32.totalorder %s212_s1, %s212_s1  ;;  %p1462_p13 = scmp.lt.s32.totalorder %s1453_s10, %s1453_s10 }
  0x40   : > { %p1456_p12 = pnand %p1454_p10, %p2064_p1 }
  0x41   : > { %p1463_p5 = por %p1462_p13, %p1461_p7 }
  0x42   : > { %p1457_p0 = pneg %p1456_p12 }
  0x44   : > { %p1464_p9 = pnand %p1463_p5, %p1457_p0 }
  0x46   : > { %1467 = shalt.err (!%p1464_p9)
}
  0x47   : > { %s2065_s11 = smov 8   ;;  %s2066_s19 = smov 128  }
  0x48   : > { %1313 = dma.hbm_to_vmem [thread:$0]  (!%p1693_p11), %s2041_s4, 2048, %s212_s1, [#allocation7], %s2066_s19, %s2066_s19, %s2065_s11  }
  0x49   : > { %s1123_s15 = sshll.u32 %s1584_s24, 11  ;;  %s1481_s12 = scalar_lea.vmem %s261_s8, 2048 }
  0x4a   : > { %s259_s9 = scalar_lea.hbm %s2040_s3, %s1123_s15  ;;  %p1482_p10 = scmp.ne.s32.totalorder %s261_s8, %s1481_s12 }
  0x4b   : > { %p2067_p9 = pneg %p1743_p2  ;;  %s1597_s7 = smov [#allocation8]  }
  0x4c   : > { %s1486_s30 = sshll.u32 %s1597_s7, 4  ;;  %s1487_s30 = int_to_ptr.vmem [resolvable:$false] %s1486_s30 }
  0x4d   : > { %p1484_p1 = pnand %p1482_p10, %p2067_p9  ;;  %s1488_s10 = scalar_lea.vmem %s1487_s30, 4096 }
  0x4e   : > { %p1489_p0 = scmp.lt.s32.totalorder %s261_s8, %s1487_s30  ;;  %p1490_p7 = scmp.lt.s32.totalorder %s1488_s10, %s1481_s12 }
  0x4f   : > { %p1485_p12 = pneg %p1484_p1 }
  0x50   : > { %p1491_p13 = por %p1490_p7, %p1489_p0 }
  0x52   : > { %p1492_p11 = pnand %p1491_p13, %p1485_p12 }
  0x54   : > { %1495 = shalt.err (!%p1492_p11)
}
  0x55   : > { %1320 = dma.hbm_to_vmem [thread:$0]  (!%p1743_p2), %s259_s9, 2048, %s261_s8, %s1747_s17, %s2066_s19, %s2066_s19, %s2065_s11  }
  0x56   : > { %272 = sbr.rel (%p1684_p8) target bundleno = 610 (0x262), region = 40  ;;  %s274_s1 = sand.u32 (!%p1684_p8), 1, %s1665_s0  }
  0x57   : > { %s1787_s13 = sand.u32 (!%p1684_p8), 1, %s1572_s21   ;;  %s275_s15 = scalar_lea.sflag (!%p1684_p8), [#allocation4], %s274_s1 }
  0x58   : > { %s1110_s14 = sshll.u32 (!%p1684_p8), %s1787_s13, 8 }
  0x59   : > { %s1790_s6 = scalar_lea.vmem (!%p1684_p8), [#allocation3], %s1110_s14 }
  0x5b   : > { %1547 = dma.done.wait (%p1674_p4), %s275_s15, 4096  }
  0x5c   : > { %1549 = vsyncadd (%p1674_p4), %s275_s15, 4294963200  ;;  %p2068_p2 = scmp.eq.s32.totalorder %s1665_s0, 0 }
  0x5e   : > { %1551 = dma.done.wait (%p2068_p2), [#allocation7], 4096   ;;  %p2069_p8 = pmov %p2068_p2 }
  0x5f   : > { %s1112_s2 = sshll.u32 %s1787_s13, 7 }
  0x60   : > { %1553 = vsyncadd (%p2069_p8), [#allocation7], 4294963200  ;;  %s1803_s29 = scalar_lea.vmem [#allocation8], %s1112_s2 }
  0x61   : > { %1555 = dma.done.wait (%p1674_p4), %s275_s15, 2048  }
  0x62   : > { %1557 = vsyncadd (%p1674_p4), %s275_s15, 4294965248  ;;  %p2070_p5 = pmov %p2068_p2 }
  0x63   : > { %p2071_p10 = pmov %p2068_p2 }
  0x64   : > { %1559 = dma.done.wait (%p2070_p5), [#allocation7], 2048  }
  0x65   : > { %1561 = vsyncadd (%p2071_p10), [#allocation7], 4294965248  ;;  %v384_v0 = vld [vmem:[#allocation6 + $0xf8] sm:$0xff]  ;;  %v383_v2 = vld [vmem:[#allocation6 + $0xf0] sm:$0xff]  ;;  %s629_s0 = sld [smem:[#allocation2]]  ;;  %s1115_s8 = sshll.u32 %s1580_s23, 7 }
  0x66   : > { %v368_v1 = vld [vmem:[#allocation6 + $0x78] sm:$0xff]  ;;  %1125 = vmatprep.subr.mxu0 %v384_v0  ;;  %v367_v3 = vld [vmem:[#allocation6 + $0x70] sm:$0xff]  ;;  %v382_v4 = vld [vmem:[#allocation6 + $0xe8] sm:$0xff]  ;;  %s1929_s17 = scalar_lea.vmem [#allocation6], %s1115_s8  ;;  %s1936_s11 = scalar_lea.vmem [#allocation10], %s1112_s2 }
  0x67   : > { %1126 = vmatpush3.msra.mxu0 %v368_v1  ;;  %v366_v5 = vld [vmem:[#allocation6 + $0x68] sm:$0xff]  ;;  %v381_v6 = vld [vmem:[#allocation6 + $0xe0] sm:$0xff]  ;;  %v380_v8 = vld [vmem:[#allocation6 + $0xd8] sm:$0xff]  ;;  %s1124_s19 = sshll.u32 %s1580_s23, 11  ;;  %s969_s18 = sshll.u32 %s1936_s11, 4  ;;  %s1987_s18 = int_to_ptr.vmem [resolvable:$true] %s969_s18 }
  0x68   : > { %1127 = vmatprep.subr.mxu0 %v383_v2  ;;  %v365_v7 = vld [vmem:[#allocation6 + $0x60] sm:$0xff]  ;;  %v364_v9 = vld [vmem:[#allocation6 + $0x58] sm:$0xff]  ;;  %v379_v10 = vld [vmem:[#allocation6 + $0xd0] sm:$0xff]  ;;  %s1985_s7 = scalar_lea.hbm %s2042_s5, %s1124_s19  ;;  %s956_s30 = scalar_lea.sflag [#allocation5], %s1787_s13 }
  0x69   : > { %1128 = vmatpush3.msra.mxu0 %v367_v3  ;;  %v363_v11 = vld [vmem:[#allocation6 + $0x50] sm:$0xff]  ;;  %v378_v12 = vld [vmem:[#allocation6 + $0xc8] sm:$0xff]  ;;  %v377_v15 = vld [vmem:[#allocation6 + $0xc0] sm:$0xff]  ;;  %s1496_s10 = scalar_lea.vmem %s1987_s18, 2048  ;;  %s1598_s23 = smov [#allocation10]  }
  0x6a   : > { %1129 = vmatprep.subr.mxu0 %v382_v4  ;;  %v386_v13 = vld [vmem:[%s1790_s6 + $0x8] sm:$0xff]  ;;  %v361_v16 = vld [vmem:[#allocation6 + $0x40] sm:$0xff]  ;;  %v376_v17 = vld [vmem:[#allocation6 + $0xb8] sm:$0xff]  ;;  %p1497_p4 = scmp.ne.s32.totalorder %s1987_s18, %s1496_s10  ;;  %s1500_s1 = sshll.u32 %s1598_s23, 4  ;;  %s1501_s1 = int_to_ptr.vmem [resolvable:$false] %s1500_s1 }
  0x6b   : > { %1130 = vmatpush3.msra.mxu0 %v366_v5  ;;  %v362_v14 = vld [vmem:[#allocation6 + $0x48] sm:$0xff]  ;;  %497 = vmatprep.mubr.f32.mxu0 %v386_v13  ;;  %v360_v18 = vld [vmem:[#allocation6 + $0x38] sm:$0xff]  ;;  %v375_v19 = vld [vmem:[#allocation6 + $0xb0] sm:$0xff]  ;;  %s630_s27 = smul.f32 0.9, %s629_s0  ;;  %s1502_s14 = scalar_lea.vmem %s1501_s1, 4096 }
  0x6c   : > { %1131 = vmatprep.subr.mxu0 %v381_v6  ;;  %v359_v20 = vld [vmem:[#allocation6 + $0x30] sm:$0xff]  ;;  %v374_v21 = vld [vmem:[#allocation6 + $0xa8] sm:$0xff]  ;;  %v373_v23 = vld [vmem:[#allocation6 + $0xa0] sm:$0xff]  ;;  %p1498_p9 = pnand %p1497_p4, %p1723_p3  ;;  %p1503_p12 = scmp.lt.s32.totalorder %s1987_s18, %s1501_s1 }
  0x6d   : > { %1132 = vmatpush3.msra.mxu0 %v365_v7  ;;  %v358_v22 = vld [vmem:[#allocation6 + $0x28] sm:$0xff]  ;;  %v357_v24 = vld [vmem:[#allocation6 + $0x20] sm:$0xff]  ;;  %v711_v25 = vld [vmem:[#allocation9 + $0x78] sm:$0xff]  ;;  %p1504_p0 = scmp.lt.s32.totalorder %s1502_s14, %s1496_s10 }
  0x6e   : > { %1133 = vmatprep.subr.mxu0 %v380_v8  ;;  %v710_v26 = vld [vmem:[#allocation9 + $0x70] sm:$0xff]  ;;  %v372_v27 = vld [vmem:[#allocation6 + $0x98] sm:$0xff]  ;;  %1237 = vmatprep.subr.mxu1 %v711_v25  ;;  %v709_v29 = vld [vmem:[#allocation9 + $0x68] sm:$0xff]  ;;  %p1499_p1 = pneg %p1498_p9 }
  0x6f   : > { %1134 = vmatpush3.msra.mxu0 %v364_v9  ;;  %v356_v28 = vld [vmem:[#allocation6 + $0x18] sm:$0xff]  ;;  %1238 = vmatpush3.msra.mxu1 %v711_v25  ;;  %v371_v30 = vld [vmem:[#allocation6 + $0x90] sm:$0xff]  ;;  %v708_v32 = vld [vmem:[#allocation9 + $0x60] sm:$0xff]  ;;  %p1505_p7 = por %p1504_p0, %p1503_p12 }
  0x70   : > { %1135 = vmatprep.subr.mxu0 %v379_v10  ;;  %1239 = vmatprep.subr.mxu1 %v710_v26  ;;  %v355_v31 = vld [vmem:[#allocation6 + $0x10] sm:$0xff]  ;;  %v370_v33 = vld [vmem:[#allocation6 + $0x88] sm:$0xff]  ;;  %v707_v35 = vld [vmem:[#allocation9 + $0x58] sm:$0xff] }
  0x71   : > { %1136 = vmatpush3.msra.mxu0 %v363_v11  ;;  %1240 = vmatpush3.msra.mxu1 %v710_v26  ;;  %v354_v34 = vld [vmem:[#allocation6 + $0x8] sm:$0xff]  ;;  %v369_v36 = vld [vmem:[#allocation6 + $0x80] sm:$0xff]  ;;  %v388_v39 = vld [vmem:[%s1790_s6 + $0x18] sm:$0xff]  ;;  %p1506_p13 = pnand %p1505_p7, %p1499_p1 }
  0x72   : > { %1137 = vmatprep.subr.mxu0 %v378_v12  ;;  %1241 = vmatprep.subr.mxu1 %v709_v29  ;;  %v353_v37 = vld [vmem:[#allocation6] sm:$0xff]  ;;  %v387_v40 = vld [vmem:[%s1790_s6 + $0x10] sm:$0xff]  ;;  %v390_v41 = vld [vmem:[%s1790_s6 + $0x28] sm:$0xff] }
  0x73   : > { %1138 = vmatpush3.msra.mxu0 %v362_v14  ;;  %1242 = vmatpush3.msra.mxu1 %v709_v29  ;;  %v385_v38 = vld [vmem:[%s1790_s6] sm:$0xff]  ;;  %v392_v43 = vld [vmem:[%s1790_s6 + $0x38] sm:$0xff]  ;;  %v391_v44 = vld [vmem:[%s1790_s6 + $0x30] sm:$0xff] }
  0x74   : > { %1139 = vmatprep.subr.mxu0 %v377_v15  ;;  %1243 = vmatprep.subr.mxu1 %v708_v32  ;;  %v389_v42 = vld [vmem:[%s1790_s6 + $0x20] sm:$0xff]  ;;  %v394_v45 = vld [vmem:[%s1790_s6 + $0x48] sm:$0xff]  ;;  %v396_v47 = vld [vmem:[%s1790_s6 + $0x58] sm:$0xff] }
  0x75   : > { %1140 = vmatpush3.msra.mxu0 %v361_v16  ;;  %1244 = vmatpush3.msra.mxu1 %v708_v32  ;;  %v393_v46 = vld [vmem:[%s1790_s6 + $0x40] sm:$0xff]  ;;  %v395_v48 = vld [vmem:[%s1790_s6 + $0x50] sm:$0xff]  ;;  %v398_v49 = vld [vmem:[%s1790_s6 + $0x68] sm:$0xff] }
  0x76   : > { %1141 = vmatprep.subr.mxu0 %v376_v17  ;;  %1245 = vmatprep.subr.mxu1 %v707_v35  ;;  %v397_v50 = vld [vmem:[%s1790_s6 + $0x60] sm:$0xff]  ;;  %v400_v51 = vld [vmem:[%s1790_s6 + $0x78] sm:$0xff]  ;;  %v399_v52 = vld [vmem:[%s1790_s6 + $0x70] sm:$0xff] }
  0x77   : > { %1142 = vmatpush3.msra.mxu0 %v360_v18  ;;  %1246 = vmatpush3.msra.mxu1 %v707_v35  ;;  %v402_v53 = vld [vmem:[%s1790_s6 + $0x88] sm:$0xff]  ;;  %v401_v54 = vld [vmem:[%s1790_s6 + $0x80] sm:$0xff]  ;;  %v404_v55 = vld [vmem:[%s1790_s6 + $0x98] sm:$0xff] }
  0x78   : > { %1143 = vmatprep.subr.mxu0 %v375_v19  ;;  %v403_v56 = vld [vmem:[%s1790_s6 + $0x90] sm:$0xff]  ;;  %v406_v57 = vld [vmem:[%s1790_s6 + $0xa8] sm:$0xff]  ;;  %v405_v58 = vld [vmem:[%s1790_s6 + $0xa0] sm:$0xff] }
  0x79   : > { %1144 = vmatpush3.msra.mxu0 %v359_v20  ;;  %v408_v59 = vld [vmem:[%s1790_s6 + $0xb8] sm:$0xff]  ;;  %v407_v60 = vld [vmem:[%s1790_s6 + $0xb0] sm:$0xff]  ;;  %v410_v61 = vld [vmem:[%s1790_s6 + $0xc8] sm:$0xff] }
  0x7a   : > { %1145 = vmatprep.subr.mxu0 %v374_v21  ;;  %v409_v62 = vld [vmem:[%s1790_s6 + $0xc0] sm:$0xff]  ;;  %v412_v63 = vld [vmem:[%s1790_s6 + $0xd8] sm:$0xff]  ;;  %v411_v0 = vld [vmem:[%s1790_s6 + $0xd0] sm:$0xff]  ;;  %v1846_v21 = vstv %s630_s27 }
  0x7b   : > { %1146 = vmatpush3.msra.mxu0 %v358_v22  ;;  %v414_v1 = vld [vmem:[%s1790_s6 + $0xe8] sm:$0xff]  ;;  %v413_v2 = vld [vmem:[%s1790_s6 + $0xe0] sm:$0xff]  ;;  %v416_v3 = vld [vmem:[%s1790_s6 + $0xf8] sm:$0xff] }
  0x7c   : > { %1147 = vmatprep.subr.mxu0 %v373_v23  ;;  %v706_v4 = vld [vmem:[#allocation9 + $0x50] sm:$0xff]  ;;  %v705_v6 = vld [vmem:[#allocation9 + $0x48] sm:$0xff]  ;;  %v704_v7 = vld [vmem:[#allocation9 + $0x40] sm:$0xff] }
  0x7d   : > { %1148 = vmatpush3.msra.mxu0 %v357_v24  ;;  %v415_v5 = vld [vmem:[%s1790_s6 + $0xf0] sm:$0xff]  ;;  %1247 = vmatprep.subr.mxu1 %v706_v4  ;;  %v703_v8 = vld [vmem:[#allocation9 + $0x38] sm:$0xff]  ;;  %v701_v10 = vld [vmem:[#allocation9 + $0x28] sm:$0xff] }
  0x7e   : > { %1149 = vmatprep.subr.mxu0 %v372_v27  ;;  %1248 = vmatpush3.msra.mxu1 %v706_v4  ;;  %v702_v9 = vld [vmem:[#allocation9 + $0x30] sm:$0xff]  ;;  %v700_v11 = vld [vmem:[#allocation9 + $0x20] sm:$0xff]  ;;  %v699_v12 = vld [vmem:[#allocation9 + $0x18] sm:$0xff] }
  0x7f   : > { %1150 = vmatpush3.msra.mxu0 %v356_v28  ;;  %1249 = vmatprep.subr.mxu1 %v705_v6  ;;  %v698_v13 = vld [vmem:[#allocation9 + $0x10] sm:$0xff]  ;;  %v697_v14 = vld [vmem:[#allocation9 + $0x8] sm:$0xff]  ;;  %v696_v15 = vld [vmem:[#allocation9] sm:$0xff] }
  0x80   : > { %1151 = vmatprep.subr.mxu0 %v371_v30  ;;  %1250 = vmatpush3.msra.mxu1 %v705_v6  ;;  %v648_v18 = vld [vmem:[%s1803_s29] sm:$0xff]  ;;  %v649_v24 = vld [vmem:[%s1803_s29 + $0x8] sm:$0xff] }
  0x81   : > { %1152 = vmatpush3.msra.mxu0 %v355_v31  ;;  %1251 = vmatprep.subr.mxu1 %v704_v7  ;;  %v664_v22 = vmul.f32 0.1, %v648_v18  ;;  %v665_v29 = vmul.f32 0.1, %v649_v24  ;;  %v650_v31 = vld [vmem:[%s1803_s29 + $0x10] sm:$0xff] }
  0x82   : > { %1153 = vmatprep.subr.mxu0 %v370_v33  ;;  %1252 = vmatpush3.msra.mxu1 %v704_v7  ;;  %v658_v24 = vld [vmem:[%s1803_s29 + $0x50] sm:$0xff] }
  0x83   : > { %1154 = vmatpush3.msra.mxu0 %v354_v34  ;;  %1253 = vmatprep.subr.mxu1 %v703_v8 }
  0x84   : > { %1155 = vmatprep.subr.mxu0 %v369_v36  ;;  %1254 = vmatpush3.msra.mxu1 %v703_v8  ;;  %v666_v36 = vmul.f32 0.1, %v650_v31 }
  0x85   : > { %1156 = vmatpush3.msra.mxu0 %v353_v37  ;;  %1255 = vmatprep.subr.mxu1 %v702_v9 }
  0x86   : > { %498 = vmatmul.mubr.f32.vlgmr.msra.gmra.mxu0 %v385_v38  ;;  %1256 = vmatpush3.msra.mxu1 %v702_v9  ;;  %v651_v38 = vld [vmem:[%s1803_s29 + $0x18] sm:$0xff]  ;;  %v656_v9 = vld [vmem:[%s1803_s29 + $0x40] sm:$0xff] }
  0x87   : > { %502 = vmatprep.mubr.f32.mxu0 %v388_v39  ;;  %1257 = vmatprep.subr.mxu1 %v701_v10 }
  0x88   : > { %1258 = vmatpush3.msra.mxu1 %v701_v10 }
  0x89   : > { %1259 = vmatprep.subr.mxu1 %v700_v11 }
  0x8a   : > { %503 = vmatmul.mubr.f32.gmra.mxu0 %v387_v40  ;;  %1260 = vmatpush3.msra.mxu1 %v700_v11 }
  0x8b   : > { %507 = vmatprep.mubr.f32.mxu0 %v390_v41  ;;  %1261 = vmatprep.subr.mxu1 %v699_v12 }
  0x8c   : > { %1262 = vmatpush3.msra.mxu1 %v699_v12 }
  0x8d   : > { %1263 = vmatprep.subr.mxu1 %v698_v13 }
  0x8e   : > { %508 = vmatmul.mubr.f32.gmra.mxu0 %v389_v42  ;;  %1264 = vmatpush3.msra.mxu1 %v698_v13 }
  0x8f   : > { %512 = vmatprep.mubr.f32.mxu0 %v392_v43  ;;  %1265 = vmatprep.subr.mxu1 %v697_v14  ;;  %v667_v43 = vmul.f32 0.1, %v651_v38 }
  0x90   : > { %1266 = vmatpush3.msra.mxu1 %v697_v14  ;;  %v672_v14 = vmul.f32 0.1, %v656_v9 }
  0x91   : > { %1267 = vmatprep.subr.mxu1 %v696_v15 }
  0x92   : > { %513 = vmatmul.mubr.f32.gmra.mxu0 %v391_v44  ;;  %1268 = vmatpush3.msra.mxu1 %v696_v15 }
  0x93   : > { %517 = vmatprep.mubr.f32.mxu0 %v394_v45  ;;  %v652_v45 = vld [vmem:[%s1803_s29 + $0x20] sm:$0xff] }
  0x96   : > { %518 = vmatmul.mubr.f32.gmra.mxu0 %v393_v46 }
  0x97   : > { %522 = vmatprep.mubr.f32.mxu0 %v396_v47 }
  0x9a   : > { %523 = vmatmul.mubr.f32.gmra.mxu0 %v395_v48 }
  0x9b   : > { %527 = vmatprep.mubr.f32.mxu0 %v398_v49 }
  0x9e   : > { %528 = vmatmul.mubr.f32.gmra.mxu0 %v397_v50  ;;  %v668_v50 = vmul.f32 0.1, %v652_v45 }
  0x9f   : > { %532 = vmatprep.mubr.f32.mxu0 %v400_v51 }
  0xa2   : > { %533 = vmatmul.mubr.f32.gmra.mxu0 %v399_v52  ;;  %v653_v52 = vld [vmem:[%s1803_s29 + $0x28] sm:$0xff] }
  0xa3   : > { %537 = vmatprep.mubr.f32.mxu0 %v402_v53 }
  0xa6   : > { %538 = vmatmul.mubr.f32.gmra.mxu0 %v401_v54 }
  0xa7   : > { %542 = vmatprep.mubr.f32.mxu0 %v404_v55 }
  0xaa   : > { %543 = vmatmul.mubr.f32.gmra.mxu0 %v403_v56 }
  0xab   : > { %547 = vmatprep.mubr.f32.mxu0 %v406_v57  ;;  %v669_v57 = vmul.f32 0.1, %v653_v52 }
  0xae   : > { %548 = vmatmul.mubr.f32.gmra.mxu0 %v405_v58 }
  0xaf   : > { %552 = vmatprep.mubr.f32.mxu0 %v408_v59  ;;  %v654_v59 = vld [vmem:[%s1803_s29 + $0x30] sm:$0xff] }
  0xb2   : > { %553 = vmatmul.mubr.f32.gmra.mxu0 %v407_v60 }
  0xb3   : > { %557 = vmatprep.mubr.f32.mxu0 %v410_v61 }
  0xb6   : > { %558 = vmatmul.mubr.f32.gmra.mxu0 %v409_v62 }
  0xb7   : > { %562 = vmatprep.mubr.f32.mxu0 %v412_v63 }
  0xba   : > { %563 = vmatmul.mubr.f32.gmra.mxu0 %v411_v0  ;;  %v670_v0 = vmul.f32 0.1, %v654_v59 }
  0xbb   : > { %567 = vmatprep.mubr.f32.mxu0 %v414_v1 }
  0xbe   : > { %568 = vmatmul.mubr.f32.gmra.mxu0 %v413_v2  ;;  %v655_v2 = vld [vmem:[%s1803_s29 + $0x38] sm:$0xff] }
  0xbf   : > { %572 = vmatprep.mubr.f32.mxu0 %v416_v3  ;;  %v671_v7 = vmul.f32 0.1, %v655_v2 }
  0xc2   : > { %573 = vmatmul.mubr.f32.gmra.mxu0 %v415_v5 }
 0x146   : > { %v1157_v16 = vpop.f32.mrf.mxu0 }
 0x148   : > { %v1158_v17 = vpop.f32.mrf.mxu0 }
 0x149   : > { %v1159_v19 = vadd.f32 %v1158_v17, %v1157_v16  ;;  %v657_v16 = vld [vmem:[%s1803_s29 + $0x48] sm:$0xff] }
 0x14a   : > { %v1160_v20 = vpop.f32.mrf.mxu0 }
 0x14b   : > { %v632_v26 = vmul.f32 %v1159_v19, %v1846_v21 }
 0x14c   : > { %v1161_v23 = vpop.f32.mrf.mxu0 }
 0x14d   : > { %v1162_v25 = vadd.f32 %v1161_v23, %v1160_v20  ;;  %v1850_v28 = vadd.f32 %v664_v22, %v632_v26  ;;  %v673_v22 = vmul.f32 0.1, %v657_v16 }
 0x14e   : > { %v1163_v27 = vpop.f32.mrf.mxu0 }
 0x14f   : > { %1269 = vmatprep.mubr.f32.mxu1 %v1850_v28  ;;  %v633_v33 = vmul.f32 %v1162_v25, %v1846_v21 }
 0x150   : > { %v1164_v30 = vpop.f32.mrf.mxu0 }
 0x151   : > { %v1165_v32 = vadd.f32 %v1164_v30, %v1163_v27  ;;  %v1855_v35 = vadd.f32 %v665_v29, %v633_v33  ;;  %v674_v30 = vmul.f32 0.1, %v658_v24  ;;  %v910_v24 = vld [vmem:[%s1929_s17 + $0x18] sm:$0xff] }
 0x152   : > { %v1166_v34 = vpop.f32.mrf.mxu0 }
 0x153   : > { %1270 = vmatmul.mubr.f32.vlgmr.msra.gmra.mxu1 %v1855_v35  ;;  %v634_v40 = vmul.f32 %v1165_v32, %v1846_v21  ;;  %v659_v32 = vld [vmem:[%s1803_s29 + $0x58] sm:$0xff] }
 0x154   : > { %v1167_v37 = vpop.f32.mrf.mxu0  ;;  %v675_v38 = vmul.f32 0.1, %v659_v32 }
 0x155   : > { %v1168_v39 = vadd.f32 %v1167_v37, %v1166_v34  ;;  %v1860_v42 = vadd.f32 %v666_v36, %v634_v40  ;;  %v660_v40 = vld [vmem:[%s1803_s29 + $0x60] sm:$0xff] }
 0x156   : > { %v1169_v41 = vpop.f32.mrf.mxu0 }
 0x157   : > { %1272 = vmatprep.mubr.f32.mxu1 %v1860_v42  ;;  %v635_v47 = vmul.f32 %v1168_v39, %v1846_v21 }
 0x158   : > { %v1170_v44 = vpop.f32.mrf.mxu0 }
 0x159   : > { %v1171_v46 = vadd.f32 %v1170_v44, %v1169_v41  ;;  %v1865_v49 = vadd.f32 %v667_v43, %v635_v47 }
 0x15a   : > { %v1172_v48 = vpop.f32.mrf.mxu0 }
 0x15b   : > { %1273 = vmatmul.mubr.f32.gmra.mxu1 %v1865_v49  ;;  %v636_v54 = vmul.f32 %v1171_v46, %v1846_v21  ;;  %v676_v46 = vmul.f32 0.1, %v660_v40 }
 0x15c   : > { %v1173_v51 = vpop.f32.mrf.mxu0 }
 0x15d   : > { %v1174_v53 = vadd.f32 %v1173_v51, %v1172_v48  ;;  %v1870_v56 = vadd.f32 %v668_v50, %v636_v54  ;;  %v661_v48 = vld [vmem:[%s1803_s29 + $0x68] sm:$0xff] }
 0x15e   : > { %v1175_v55 = vpop.f32.mrf.mxu0  ;;  %v677_v54 = vmul.f32 0.1, %v661_v48 }
 0x15f   : > { %1275 = vmatprep.mubr.f32.mxu1 %v1870_v56  ;;  %v637_v61 = vmul.f32 %v1174_v53, %v1846_v21 }
 0x160   : > { %v1176_v58 = vpop.f32.mrf.mxu0 }
 0x161   : > { %v1177_v60 = vadd.f32 %v1176_v58, %v1175_v55  ;;  %v1875_v63 = vadd.f32 %v669_v57, %v637_v61  ;;  %v662_v57 = vld [vmem:[%s1803_s29 + $0x70] sm:$0xff] }
 0x162   : > { %v1178_v62 = vpop.f32.mrf.mxu0 }
 0x163   : > { %1276 = vmatmul.mubr.f32.gmra.mxu1 %v1875_v63  ;;  %v638_v4 = vmul.f32 %v1177_v60, %v1846_v21 }
 0x164   : > { %v1179_v1 = vpop.f32.mrf.mxu0 }
 0x165   : > { %v1180_v3 = vadd.f32 %v1179_v1, %v1178_v62  ;;  %v1880_v6 = vadd.f32 %v670_v0, %v638_v4  ;;  %v678_v62 = vmul.f32 0.1, %v662_v57  ;;  %v663_v1 = vld [vmem:[%s1803_s29 + $0x78] sm:$0xff] }
 0x166   : > { %v1181_v5 = vpop.f32.mrf.mxu0 }
 0x167   : > { %1278 = vmatprep.mubr.f32.mxu1 %v1880_v6  ;;  %v639_v11 = vmul.f32 %v1180_v3, %v1846_v21 }
 0x168   : > { %v1182_v8 = vpop.f32.mrf.mxu0 }
 0x169   : > { %v1183_v10 = vadd.f32 %v1182_v8, %v1181_v5  ;;  %v1885_v13 = vadd.f32 %v671_v7, %v639_v11  ;;  %v679_v5 = vmul.f32 0.1, %v663_v1  ;;  %v874_v11 = vmul.f32 0.5945349, %v1855_v35 }
 0x16a   : > { %v1184_v12 = vpop.f32.mrf.mxu0 }
 0x16b   : > { %1279 = vmatmul.mubr.f32.gmra.mxu1 %v1885_v13  ;;  %v640_v18 = vmul.f32 %v1183_v10, %v1846_v21 }
 0x16c   : > { %v1185_v15 = vpop.f32.mrf.mxu0 }
 0x16d   : > { %v1186_v17 = vadd.f32 %v1185_v15, %v1184_v12  ;;  %v1890_v20 = vadd.f32 %v672_v14, %v640_v18  ;;  %v908_v12 = vld [vmem:[%s1929_s17 + $0x8] sm:$0xff]  ;;  %v873_v15 = vmul.f32 0.5945349, %v1850_v28  ;;  %v876_v28 = vmul.f32 0.5945349, %v1865_v49 }
 0x16e   : > { %v1187_v19 = vpop.f32.mrf.mxu0  ;;  %v878_v49 = vmul.f32 0.5945349, %v1875_v63  ;;  %v880_v63 = vmul.f32 0.5945349, %v1885_v13 }
 0x16f   : > { %1281 = vmatprep.mubr.f32.mxu1 %v1890_v20  ;;  %v641_v26 = vmul.f32 %v1186_v17, %v1846_v21  ;;  %v907_v17 = vld [vmem:[%s1929_s17] sm:$0xff] }
 0x170   : > { %v1188_v23 = vpop.f32.mrf.mxu0 }
 0x171   : > { %v1189_v25 = vadd.f32 %v1188_v23, %v1187_v19  ;;  %v1895_v29 = vadd.f32 %v673_v22, %v641_v26 }
 0x172   : > { %v1190_v27 = vpop.f32.mrf.mxu0 }
 0x173   : > { %1282 = vmatmul.mubr.f32.gmra.mxu1 %v1895_v29  ;;  %v642_v34 = vmul.f32 %v1189_v25, %v1846_v21  ;;  %v882_v13 = vmul.f32 0.5945349, %v1895_v29 }
 0x174   : > { %v1191_v31 = vpop.f32.mrf.mxu0 }
 0x175   : > { %v1192_v33 = vadd.f32 %v1191_v31, %v1190_v27  ;;  %v1900_v37 = vadd.f32 %v674_v30, %v642_v34  ;;  %v875_v30 = vmul.f32 0.5945349, %v1860_v42  ;;  %v909_v31 = vld [vmem:[%s1929_s17 + $0x10] sm:$0xff]  ;;  %v877_v42 = vmul.f32 0.5945349, %v1870_v56 }
 0x176   : > { %v1193_v36 = vpop.f32.mrf.mxu0  ;;  %v879_v56 = vmul.f32 0.5945349, %v1880_v6  ;;  %v881_v6 = vmul.f32 0.5945349, %v1890_v20 }
 0x177   : > { %1284 = vmatprep.mubr.f32.mxu1 %v1900_v37  ;;  %v643_v43 = vmul.f32 %v1192_v33, %v1846_v21  ;;  %v883_v20 = vmul.f32 0.5945349, %v1900_v37 }
 0x178   : > { %v1194_v39 = vpop.f32.mrf.mxu0 }
 0x179   : > { %v1195_v41 = vadd.f32 %v1194_v39, %v1193_v36  ;;  %v1905_v45 = vadd.f32 %v675_v38, %v643_v43  ;;  %v912_v39 = vld [vmem:[%s1929_s17 + $0x28] sm:$0xff] }
 0x17a   : > { %v1196_v44 = vpop.f32.mrf.mxu0 }
 0x17b   : > { %1285 = vmatmul.mubr.f32.gmra.mxu1 %v1905_v45  ;;  %v644_v51 = vmul.f32 %v1195_v41, %v1846_v21  ;;  %v884_v29 = vmul.f32 0.5945349, %v1905_v45 }
 0x17c   : > { %v1197_v47 = vpop.f32.mrf.mxu0 }
 0x17d   : > { %v1198_v50 = vadd.f32 %v1197_v47, %v1196_v44  ;;  %v1910_v53 = vadd.f32 %v676_v46, %v644_v51  ;;  %v911_v44 = vld [vmem:[%s1929_s17 + $0x20] sm:$0xff] }
 0x17e   : > { %v1199_v52 = vpop.f32.mrf.mxu0 }
 0x17f   : > { %1287 = vmatprep.mubr.f32.mxu1 %v1910_v53  ;;  %v645_v59 = vmul.f32 %v1198_v50, %v1846_v21  ;;  %v885_v37 = vmul.f32 0.5945349, %v1910_v53 }
 0x180   : > { %v1200_v55 = vpop.f32.mrf.mxu0 }
 0x181   : > { %v1201_v58 = vadd.f32 %v1200_v55, %v1199_v52  ;;  %v1915_v61 = vadd.f32 %v677_v54, %v645_v59  ;;  %v914_v52 = vld [vmem:[%s1929_s17 + $0x38] sm:$0xff] }
 0x182   : > { %v1202_v60 = vpop.f32.mrf.mxu0 }
 0x183   : > { %1288 = vmatmul.mubr.f32.gmra.mxu1 %v1915_v61  ;;  %v646_v3 = vmul.f32 %v1201_v58, %v1846_v21  ;;  %v913_v58 = vld [vmem:[%s1929_s17 + $0x30] sm:$0xff]  ;;  %v886_v45 = vmul.f32 0.5945349, %v1915_v61 }
 0x184   : > { %v1203_v0 = vpop.f32.mrf.mxu0 }
 0x185   : > { %v1204_v2 = vadd.f32 %v1203_v0, %v1202_v60  ;;  %v1920_v4 = vadd.f32 %v678_v62, %v646_v3 }
 0x187   : > { %1290 = vmatprep.mubr.f32.mxu1 %v1920_v4  ;;  %v647_v7 = vmul.f32 %v1204_v2, %v1846_v21  ;;  %v916_v2 = vld [vmem:[%s1929_s17 + $0x48] sm:$0xff] }
 0x189   : > { %v1924_v8 = vadd.f32 %v679_v5, %v647_v7 }
 0x18b   : > { %1291 = vmatmul.mubr.f32.gmra.mxu1 %v1924_v8  ;;  %v888_v61 = vmul.f32 0.5945349, %v1924_v8 }
 0x213   : > { %v1271_v9 = vpop.f32.mrf.mxu1 }
 0x214   : > { %v858_v10 = vmul.f32 0.4054651, %v1271_v9  ;;  %v915_v9 = vld [vmem:[%s1929_s17 + $0x40] sm:$0xff] }
 0x215   : > { %v778_v14 = vpop.f32.mrf.mxu1 }
 0x216   : > { %v890_v21 = vadd.f32 %v874_v11, %v858_v10  ;;  %v857_v16 = vmul.f32 0.4054651, %v778_v14 }
 0x218   : > { %v924_v18 = vadd.f32 %v908_v12, %v890_v21  ;;  %v889_v19 = vadd.f32 %v873_v15, %v857_v16  ;;  %v918_v21 = vld [vmem:[%s1929_s17 + $0x58] sm:$0xff] }
 0x21a   : > { %940 = vst [vmem:[%s1936_s11 + $0x8] sm:$0xff] %v924_v18  ;;  %v923_v35 = vadd.f32 %v907_v17, %v889_v19  ;;  %v917_v19 = vld [vmem:[%s1929_s17 + $0x50] sm:$0xff] }
 0x21b   : > { %v1274_v22 = vpop.f32.mrf.mxu1 }
 0x21c   : > { %939 = vst [vmem:[%s1936_s11] sm:$0xff] %v923_v35  ;;  %v860_v23 = vmul.f32 0.4054651, %v1274_v22 }
 0x21d   : > { %v788_v25 = vpop.f32.mrf.mxu1 }
 0x21e   : > { %v892_v26 = vadd.f32 %v876_v28, %v860_v23  ;;  %v859_v27 = vmul.f32 0.4054651, %v788_v25  ;;  %v920_v25 = vld [vmem:[%s1929_s17 + $0x68] sm:$0xff] }
 0x220   : > { %v926_v32 = vadd.f32 %v910_v24, %v892_v26  ;;  %v891_v33 = vadd.f32 %v875_v30, %v859_v27 }
 0x222   : > { %942 = vst [vmem:[%s1936_s11 + $0x18] sm:$0xff] %v926_v32  ;;  %v925_v34 = vadd.f32 %v909_v31, %v891_v33  ;;  %v919_v31 = vld [vmem:[%s1929_s17 + $0x60] sm:$0xff] }
 0x223   : > { %v1277_v36 = vpop.f32.mrf.mxu1 }
 0x224   : > { %941 = vst [vmem:[%s1936_s11 + $0x10] sm:$0xff] %v925_v34  ;;  %v862_v38 = vmul.f32 0.4054651, %v1277_v36 }
 0x225   : > { %v798_v40 = vpop.f32.mrf.mxu1 }
 0x226   : > { %v894_v41 = vadd.f32 %v878_v49, %v862_v38  ;;  %v861_v43 = vmul.f32 0.4054651, %v798_v40  ;;  %v922_v49 = vld [vmem:[%s1929_s17 + $0x78] sm:$0xff] }
 0x228   : > { %v928_v46 = vadd.f32 %v912_v39, %v894_v41  ;;  %v893_v47 = vadd.f32 %v877_v42, %v861_v43  ;;  %v887_v41 = vmul.f32 0.5945349, %v1920_v4  ;;  %v921_v43 = vld [vmem:[%s1929_s17 + $0x70] sm:$0xff] }
 0x22a   : > { %944 = vst [vmem:[%s1936_s11 + $0x28] sm:$0xff] %v928_v46  ;;  %v927_v48 = vadd.f32 %v911_v44, %v893_v47 }
 0x22b   : > { %v1280_v50 = vpop.f32.mrf.mxu1 }
 0x22c   : > { %943 = vst [vmem:[%s1936_s11 + $0x20] sm:$0xff] %v927_v48  ;;  %v864_v51 = vmul.f32 0.4054651, %v1280_v50 }
 0x22d   : > { %v808_v54 = vpop.f32.mrf.mxu1 }
 0x22e   : > { %v896_v55 = vadd.f32 %v880_v63, %v864_v51  ;;  %v863_v57 = vmul.f32 0.4054651, %v808_v54 }
 0x230   : > { %v930_v59 = vadd.f32 %v914_v52, %v896_v55  ;;  %v895_v60 = vadd.f32 %v879_v56, %v863_v57 }
 0x232   : > { %946 = vst [vmem:[%s1936_s11 + $0x38] sm:$0xff] %v930_v59  ;;  %v929_v62 = vadd.f32 %v913_v58, %v895_v60 }
 0x233   : > { %v1283_v0 = vpop.f32.mrf.mxu1 }
 0x234   : > { %945 = vst [vmem:[%s1936_s11 + $0x30] sm:$0xff] %v929_v62  ;;  %v866_v1 = vmul.f32 0.4054651, %v1283_v0 }
 0x235   : > { %v818_v3 = vpop.f32.mrf.mxu1 }
 0x236   : > { %v898_v5 = vadd.f32 %v882_v13, %v866_v1  ;;  %v865_v7 = vmul.f32 0.4054651, %v818_v3 }
 0x238   : > { %v932_v10 = vadd.f32 %v916_v2, %v898_v5  ;;  %v897_v11 = vadd.f32 %v881_v6, %v865_v7 }
 0x23a   : > { %948 = vst [vmem:[%s1936_s11 + $0x48] sm:$0xff] %v932_v10  ;;  %v931_v12 = vadd.f32 %v915_v9, %v897_v11 }
 0x23b   : > { %v1286_v14 = vpop.f32.mrf.mxu1 }
 0x23c   : > { %947 = vst [vmem:[%s1936_s11 + $0x40] sm:$0xff] %v931_v12  ;;  %v868_v15 = vmul.f32 0.4054651, %v1286_v14 }
 0x23d   : > { %v828_v16 = vpop.f32.mrf.mxu1 }
 0x23e   : > { %v900_v17 = vadd.f32 %v884_v29, %v868_v15  ;;  %v867_v18 = vmul.f32 0.4054651, %v828_v16 }
 0x240   : > { %v934_v35 = vadd.f32 %v918_v21, %v900_v17  ;;  %v899_v22 = vadd.f32 %v883_v20, %v867_v18 }
 0x242   : > { %950 = vst [vmem:[%s1936_s11 + $0x58] sm:$0xff] %v934_v35  ;;  %v933_v23 = vadd.f32 %v917_v19, %v899_v22 }
 0x243   : > { %v1289_v28 = vpop.f32.mrf.mxu1 }
 0x244   : > { %949 = vst [vmem:[%s1936_s11 + $0x50] sm:$0xff] %v933_v23  ;;  %v870_v24 = vmul.f32 0.4054651, %v1289_v28 }
 0x245   : > { %v838_v26 = vpop.f32.mrf.mxu1 }
 0x246   : > { %v902_v27 = vadd.f32 %v886_v45, %v870_v24  ;;  %v869_v30 = vmul.f32 0.4054651, %v838_v26 }
 0x248   : > { %v936_v32 = vadd.f32 %v920_v25, %v902_v27  ;;  %v901_v33 = vadd.f32 %v885_v37, %v869_v30 }
 0x24a   : > { %952 = vst [vmem:[%s1936_s11 + $0x68] sm:$0xff] %v936_v32  ;;  %v935_v34 = vadd.f32 %v919_v31, %v901_v33 }
 0x24b   : > { %v1292_v36 = vpop.f32.mrf.mxu1 }
 0x24c   : > { %951 = vst [vmem:[%s1936_s11 + $0x60] sm:$0xff] %v935_v34  ;;  %v872_v38 = vmul.f32 0.4054651, %v1292_v36 }
 0x24d   : > { %v848_v39 = vpop.f32.mrf.mxu1 }
 0x24e   : > { %v904_v40 = vadd.f32 %v888_v61, %v872_v38  ;;  %v871_v53 = vmul.f32 0.4054651, %v848_v39 }
 0x250   : > { %v938_v42 = vadd.f32 %v922_v49, %v904_v40  ;;  %v903_v44 = vadd.f32 %v887_v41, %v871_v53 }
 0x252   : > { %954 = vst [vmem:[%s1936_s11 + $0x78] sm:$0xff] %v938_v42  ;;  %v937_v8 = vadd.f32 %v921_v43, %v903_v44 }
 0x254   : > { %953 = vst [vmem:[%s1936_s11 + $0x70] sm:$0xff] %v937_v8 }
 0x255   : > { %1509 = shalt.err (!%p1506_p13)
}
 0x256   : > { %s1510_s15 = scalar_lea.hbm %s1985_s7, 2048  ;;  %s1514_s29 = scalar_lea.hbm %s2042_s5, 4096 }
 0x257   : > { %p1511_p11 = scmp.ne.s32.totalorder %s1985_s7, %s1510_s15  ;;  %p1515_p5 = scmp.lt.s32.totalorder %s1985_s7, %s2042_s5 }
 0x258   : > { %p1516_p10 = scmp.lt.s32.totalorder %s1514_s29, %s1510_s15 }
 0x259   : > { %p1512_p2 = pnand %p1511_p11, %p1723_p3 }
 0x25a   : > { %p1517_p4 = por %p1516_p10, %p1515_p5 }
 0x25b   : > { %p1513_p8 = pneg %p1512_p2 }
 0x25d   : > { %p1518_p9 = pnand %p1517_p4, %p1513_p8 }
 0x25f   : > { %1521 = shalt.err (!%p1518_p9)
}
 0x260   : > { %s1599_s8 = smov 128   ;;  %s1600_s17 = smov 8  }
 0x261   : > { %1305 = dma.vmem_to_hbm [thread:$0]  (%p1723_p3), %s1987_s18, 2048, %s1985_s7, %s956_s30, %s1599_s8, %s1599_s8, %s1600_s17  }
 0x262 PF: > { %s984_s11 = sand.u32 1, %s1568_s20   ;;  %p2072_p1 = scmp.ge.s32.totalorder %s1588_s25, 2 }
 0x263   : > { %s985_s19 = scalar_lea.sflag [#allocation5], %s984_s11 }
 0x264   : > { %p1322_p12 = pnand %p2072_p1, %p1679_p6 }
 0x266   : > { %p1323_p0 = pneg %p1322_p12 }
 0x268   : > { %1563 = dma.done.wait (%p1323_p0), %s985_s19, 2048  }
 0x269   : > { %1565 = vsyncadd (%p1323_p0), %s985_s19, 4294965248  ;;  %s23_s25 = sadd.s32 1, %s1588_s25   ;;  %s2073_s16 = sld [smem:[#allocation16_spill]] }
 0x26a   : > { %p20_p7 = scmp.ge.s32.totalorder %s23_s25, 4   ;;  %s2074_s20 = smov %s1572_s21 }
 0x26b   : > { %s2075_s21 = smov %s1576_s22  ;;  %s2076_s22 = smov %s1733_s26 }
 0x26c   : > { %s2077_s23 = smov %s1584_s24  ;;  %22 = sbr.rel (!%p20_p7) target bundleno = 11 (0xb), region = 114 }
 0x26f   : > { %s2078_s24 = smov %s2073_s16 }
 0x271   :  { %990 = vsyncpa [#allocation4], 1 }
 0x272   :  { %992 = vsyncpa [#allocation4 + $0x1], 1 }
 0x273   :  { %993 = vsyncpa [#allocation7], 1 }
 0x274   :  { %994 = vsyncpa [#allocation5], 1 }
 0x275   :  { %996 = vsyncpa [#allocation5 + $0x1], 1 }

</bundles_post_ra>
